<compile_context>
chip_gen: v5e
topology: v5e:2x2
jax: 0.10.0
libtpu: 0.0.40
codegen_flags: <defaults>
</compile_context>

<pallas_src>
import jax
import jax.numpy as jnp
from jax import lax
from jax.experimental import pallas as pl
from jax.experimental.pallas import tpu as pltpu


def _kernel(x_ref, gi_ref,
            w1_ref, b1_ref,
            wts_ref, bts_ref,
            wa_ref, ba_ref,
            acc_ref, lsum_ref, gmax_ref):
    step = pl.program_id(1)

    @pl.when(step == 0)
    def _init():
        gmax_ref[...] = jnp.full(gmax_ref.shape, -1e30, jnp.float32)
        lsum_ref[...] = jnp.zeros(lsum_ref.shape, jnp.float32)
        acc_ref[...] = jnp.zeros(acc_ref.shape, jnp.float32)

    x = x_ref[...]                       # (BN, L)   f32 or bf16
    gi = gi_ref[...]                     # (BN, 1)   int32, -1 for padded rows
    bn = x.shape[0]
    g = acc_ref.shape[-1]

    # feature_extractor: Linear(L, D) -> ReLU (Dropout = identity at eval)
    h = jnp.dot(x, w1_ref[...], preferred_element_type=jnp.float32) + b1_ref[...]
    h = jnp.maximum(h, 0.0)              # (BN, D) f32

    # gated attention: fused [wt | ws] -> one (D, 2F) matmul, then slice.
    mx_dtype = wts_ref.dtype             # bf16 on the fast path, f32 otherwise
    h_mx = h.astype(mx_dtype)            # cast once, reused for both matmuls
    ts = (jnp.dot(h_mx, wts_ref[...], preferred_element_type=jnp.float32)
          + bts_ref[...])                # (BN, 2F) f32
    f = wa_ref.shape[-1]
    at = jnp.tanh(ts[:, :f])                              # (BN, F)
    as_ = 0.5 * (jnp.tanh(0.5 * ts[:, f:]) + 1.0)         # sigmoid via one tanh
    gated = at * as_                                      # (BN, F)

    # attention score (K=1): VPU multiply + lane reduce instead of a matmul.
    a_col = jnp.sum(gated * wa_ref[...], axis=-1, keepdims=True) + ba_ref[...]

    # group membership rebuilt in-kernel from the int index column.
    iota = lax.broadcasted_iota(jnp.int32, (bn, g), 1)
    oh = (iota == gi).astype(jnp.float32)   # (BN, G); all-zero rows for padding
    valid = gi >= 0                          # (BN, 1)

    # online softmax with a single global running max (shift-invariant).
    a_valid = jnp.where(valid, a_col, jnp.float32(-1e30))   # mask padded rows
    tile_max = jnp.max(a_valid, axis=0, keepdims=True)       # (1, 1)
    m_old = gmax_ref[...]
    m_new = jnp.maximum(m_old, tile_max)                     # (1, 1)
    alpha = jnp.exp(m_old - m_new)                           # (1, 1)
    e_col = jnp.exp(a_valid - m_new)                         # (BN, 1); pads -> 0

    # lsum[g] += sum_n e_col[n] * oh[n, g]
    lsum_ref[...] = alpha * lsum_ref[...] + jnp.sum(e_col * oh, axis=0,
                                                    keepdims=True)
    # acc[d, g] += sum_n (h*e_col)[n, d] * oh[n, g]
    # (e_col folded into h on the VPU; contraction along dim 0 of both operands
    #  keeps the big (BN, D) tile un-transposed in VMEM.)
    he = (h * e_col).astype(mx_dtype)                        # (BN, D)
    acc_ref[...] = alpha * acc_ref[...] + lax.dot_general(
        he, oh.astype(mx_dtype), (((0,), (0,)), ((), ())),
        preferred_element_type=jnp.float32)
    gmax_ref[...] = m_new


def attention_gated_mb_ssl(x, group_idx, num_groups, params, *,
                           block_n=4096, num_splits=2, use_bf16_matmul=True,
                           vmem_limit_bytes=None):
    """Returns (M (G, D), proj (G, F)) matching the PyTorch module (eval)."""
    n, l = x.shape
    g = int(num_groups)
    d = params["w1"].shape[1]
    f = params["wt"].shape[1]

    # --- wrapper-side weight fusion / reshaping --------------------------------
    w_ts = jnp.concatenate([params["wt"], params["ws"]], axis=1)   # (D, 2F)
    b_ts = jnp.concatenate([params["bt"], params["bs"]], axis=1)   # (1, 2F)
    wa_row = jnp.transpose(params["wa"])                           # (1, F)
    ba = params["ba"]                                              # (1, 1)
    w1, b1 = params["w1"], params["b1"]
    wp, bp = params["wp"], params["bp"]

    if use_bf16_matmul:      # bf16 MXU operands (good on v5e/v6e/v7x), f32 accum
        x_in = x.astype(jnp.bfloat16)
        w1_in = w1.astype(jnp.bfloat16)
        w_ts_in = w_ts.astype(jnp.bfloat16)
        align = 16           # bf16 min sublane tile
    else:
        x_in, w1_in, w_ts_in = x, w1, w_ts
        align = 8

    num_splits = max(1, int(num_splits))

    # --- N tiling (VMEM-budget aware) ------------------------------------------
    itemsize = x_in.dtype.itemsize
    budget = 12 * 2**20                      # keep 2x x-tiles well under 64 MiB VMEM
    bn_cap = max(align, (budget // (2 * l * itemsize)) // align * align)
    bn = max(align, min(int(block_n), bn_cap, pl.cdiv(n, num_splits)))
    bn = pl.cdiv(bn, align) * align

    rows_per_split = pl.cdiv(n, num_splits * bn) * bn
    steps = rows_per_split // bn
    n_pad = rows_per_split * num_splits

    gi = group_idx.reshape(-1, 1).astype(jnp.int32)
    if n_pad != n:            # padded rows get group index -1 -> zero membership
        x_in = jnp.pad(x_in, ((0, n_pad - n), (0, 0)))
        gi = jnp.pad(gi, ((0, n_pad - n), (0, 0)), constant_values=-1)

    grid = (num_splits, steps)
    tile_map = lambda s, i: (s * steps + i, 0)
    const_map = lambda s, i: (0, 0)
    full = lambda a: pl.BlockSpec(a.shape, const_map)    # weights VMEM-resident
    split_map = lambda s, i: (s, 0, 0)

    in_specs = [
        pl.BlockSpec((bn, l), tile_map),     # x
        pl.BlockSpec((bn, 1), tile_map),     # group index column
        full(w1_in), full(b1),
        full(w_ts_in), full(b_ts),
        full(wa_row), full(ba),
    ]
    out_specs = (
        pl.BlockSpec((None, d, g), split_map),   # partial acc  (per split)
        pl.BlockSpec((None, 1, g), split_map),   # partial sum
        pl.BlockSpec((None, 1, 1), split_map),   # partial max
    )
    out_shape = (
        jax.ShapeDtypeStruct((num_splits, d, g), jnp.float32),
        jax.ShapeDtypeStruct((num_splits, 1, g), jnp.float32),
        jax.ShapeDtypeStruct((num_splits, 1, 1), jnp.float32),
    )

    def _bytes(a):
        return int(a.size) * a.dtype.itemsize

    weight_bytes = sum(_bytes(a) for a in (w1_in, b1, w_ts_in, b_ts, wa_row, ba))
    if vmem_limit_bytes is None:
        need = (4 * (bn * l * itemsize + bn * 4) + 2 * weight_bytes
                + 8 * (d * g + g + 1) * 4 + (1 << 20))
        vmem_limit_bytes = int(min(100 << 20, max(32 << 20, need)))

    cost = pl.CostEstimate(
        flops=int(2 * n_pad * (l * d + d * 2 * f + f + d * g)),
        transcendentals=int(n_pad * (2 * f + 2)),
        bytes_accessed=int(_bytes(x_in) + _bytes(gi) + weight_bytes
                           + num_splits * (d * g + g + 1) * 4),
    )

    acc_s, lsum_s, gmax_s = pl.pallas_call(
        _kernel,
        out_shape=out_shape,
        grid_spec=pltpu.PrefetchScalarGridSpec(
            num_scalar_prefetch=0,
            grid=grid,
            in_specs=in_specs,
            out_specs=out_specs,
        ),
        compiler_params=pltpu.CompilerParams(
            dimension_semantics=("parallel", "arbitrary"),   # v7x: 2 TCs over N
            vmem_limit_bytes=vmem_limit_bytes),
        cost_estimate=cost,
    )(x_in, gi, w1_in, b1, w_ts_in, b_ts, wa_row, ba)

    # --- tiny cross-split combine + projector + L2 normalize (plain JAX) -------
    m_star = jnp.max(gmax_s, axis=0)                 # (1, 1)
    scale = jnp.exp(gmax_s - m_star)                 # (S, 1, 1)
    lsum = jnp.sum(lsum_s * scale, axis=0)           # (1, G)
    acc = jnp.sum(acc_s * scale, axis=0)             # (D, G)
    M = (acc / jnp.maximum(lsum, 1e-30)).T           # (G, D)
    p = M @ wp + bp                                  # (G, F)
    nrm = jnp.sqrt(jnp.sum(p * p, axis=1, keepdims=True))
    proj = p / jnp.maximum(nrm, 1e-12)               # F.normalize(p=2, dim=1)
    return M, proj


def init_params(key, L):
    D = L // 8
    F = D // 4
    K = 1
    ks = jax.random.split(key, 10)

    def lin(kw, kb, fan_in, fan_out):
        bound = 1.0 / jnp.sqrt(fan_in)
        w = jax.random.uniform(kw, (fan_in, fan_out), jnp.float32, -bound, bound)
        b = jax.random.uniform(kb, (1, fan_out), jnp.float32, -bound, bound)
        return w, b

    w1, b1 = lin(ks[0], ks[1], L, D)      # feature_extractor Linear(L, D)
    wt, bt = lin(ks[2], ks[3], D, F)      # attention_t Linear(D, F)
    ws, bs = lin(ks[4], ks[5], D, F)      # attention_s Linear(D, F)
    wa, ba = lin(ks[6], ks[7], F, K)      # attention Linear(F, K)
    wp, bp = lin(ks[8], ks[9], D * K, F)  # projector Linear(D*K, F)
    return dict(w1=w1, b1=b1, wt=wt, bt=bt, ws=ws, bs=bs,
                wa=wa, ba=ba, wp=wp, bp=bp)


def reference_forward(x, onehot, params):
    """Pure-JAX mirror of the PyTorch forward (eval mode)."""
    h = jnp.maximum(x @ params["w1"] + params["b1"], 0.0)
    at = jnp.tanh(h @ params["wt"] + params["bt"])
    as_ = 1.0 / (1.0 + jnp.exp(-(h @ params["ws"] + params["bs"])))
    a = (at * as_) @ params["wa"] + params["ba"]             # (N, 1)
    masked = jnp.where(onehot > 0, a, -jnp.inf)              # (N, G)
    w = jax.nn.softmax(masked, axis=0)                       # per-bag softmax
    M = w.T @ h                                              # (G, D)
    p = M @ params["wp"] + params["bp"]
    nrm = jnp.sqrt(jnp.sum(p * p, axis=1, keepdims=True))
    return M, p / jnp.maximum(nrm, 1e-12)


if __name__ == "__main__":
    jax.config.update("jax_default_matmul_precision", "highest")

    # Small shapes consistent with the module: nf = L = 128 -> D = 16, F = 4.
    L = 128            # nf
    N = 16             # number of instances
    NUM_BAGS = 3       # number of unique bag ids (static)

    key = jax.random.PRNGKey(0)
    kx, kp = jax.random.split(key)

    x = jax.random.normal(kx, (N, L), dtype=jnp.float32)
    idxs = jnp.array([0, 0, 0, 1, 1, 1, 1, 1, 2, 2, 2, 2, 2, 2, 2, 2],
                     dtype=jnp.int32)

    # glue: unique bag ids -> dense group index column (replaces torch.unique loop)
    u = jnp.unique(idxs, size=NUM_BAGS)
    onehot = (idxs[:, None] == u[None, :]).astype(jnp.float32)
    gidx = jnp.argmax(onehot, axis=1).astype(jnp.int32)

    params = init_params(kp, L)
    M_ref, proj_ref = reference_forward(x, onehot, params)

    D, F = L // 8, (L // 8) // 4

    # f32 path, single split, small tile -> multi-step online accumulation.
    M1, p1 = attention_gated_mb_ssl(x, gidx, NUM_BAGS, params,
                                    block_n=8, num_splits=1,
                                    use_bf16_matmul=False)
    # f32 path, two parallel splits (v7x megacore layout).
    M2, p2 = attention_gated_mb_ssl(x, gidx, NUM_BAGS, params,
                                    block_n=8, num_splits=2,
                                    use_bf16_matmul=False)
    # bf16 MXU-operand path, two splits (exercises an all-padded split too).
    M3, p3 = attention_gated_mb_ssl(x, gidx, NUM_BAGS, params,
                                    block_n=16, num_splits=2,
                                    use_bf16_matmul=True)
    jax.block_until_ready((M1, p1, M2, p2, M3, p3))

    assert M1.shape == (NUM_BAGS, D) and p1.shape == (NUM_BAGS, F)
    assert jnp.allclose(M1, M_ref, rtol=2e-2, atol=2e-2)
    assert jnp.allclose(p1, proj_ref, rtol=2e-2, atol=2e-2)
    assert jnp.allclose(M2, M_ref, rtol=2e-2, atol=2e-2)
    assert jnp.allclose(p2, proj_ref, rtol=2e-2, atol=2e-2)
    assert jnp.allclose(M3, M_ref, rtol=1e-1, atol=1e-1)
    assert jnp.allclose(p3, proj_ref, rtol=1e-1, atol=1e-1)

    print("KERNEL_OK")
</pallas_src>

<mosaic_0001>
module attributes {stable_mosaic.version = 11 : i64} {
  func.func @_kernel(%arg0: i32, %arg1: i32, %arg2: memref<8x128xf32, #tpu.memory_space<vmem>>, %arg3: memref<8x1xi32, #tpu.memory_space<vmem>>, %arg4: memref<128x16xf32, #tpu.memory_space<vmem>>, %arg5: memref<1x16xf32, #tpu.memory_space<vmem>>, %arg6: memref<16x8xf32, #tpu.memory_space<vmem>>, %arg7: memref<1x8xf32, #tpu.memory_space<vmem>>, %arg8: memref<1x4xf32, #tpu.memory_space<vmem>>, %arg9: memref<1x1xf32, #tpu.memory_space<vmem>>, %arg10: memref<1x16x3xf32, #tpu.memory_space<vmem>>, %arg11: memref<1x1x3xf32, #tpu.memory_space<vmem>>, %arg12: memref<1x1x1xf32, #tpu.memory_space<vmem>>) attributes {dimension_semantics = [#tpu.dimension_semantics<parallel>, #tpu.dimension_semantics<arbitrary>], iteration_bounds = array<i64: 1, 2>, scalar_prefetch = 0 : i64, scratch_operands = 0 : i64, tpu.core_type = #tpu.core_type<tc>, window_params = [{transform_indices = @transform_0, window_bounds = array<i64: 8, 128>}, {transform_indices = @transform_1, window_bounds = array<i64: 8, 1>}, {pipeline_mode = #tpu.pipeline_mode<synchronous>, transform_indices = @transform_2, window_bounds = array<i64: 128, 16>}, {pipeline_mode = #tpu.pipeline_mode<synchronous>, transform_indices = @transform_3, window_bounds = array<i64: 1, 16>}, {pipeline_mode = #tpu.pipeline_mode<synchronous>, transform_indices = @transform_4, window_bounds = array<i64: 16, 8>}, {pipeline_mode = #tpu.pipeline_mode<synchronous>, transform_indices = @transform_5, window_bounds = array<i64: 1, 8>}, {pipeline_mode = #tpu.pipeline_mode<synchronous>, transform_indices = @transform_6, window_bounds = array<i64: 1, 4>}, {pipeline_mode = #tpu.pipeline_mode<synchronous>, transform_indices = @transform_7, window_bounds = array<i64: 1, 1>}, {transform_indices = @transform_8, window_bounds = array<i64: 1, 16, 3>}, {transform_indices = @transform_9, window_bounds = array<i64: 1, 1, 3>}, {transform_indices = @transform_10, window_bounds = array<i64: 1, 1, 1>}]} {
    %c0_i32 = arith.constant 0 : i32
    %0 = arith.cmpi eq, %arg1, %c0_i32 : i32
    %1 = arith.extui %0 : i1 to i32
    %c0_i32_0 = arith.constant 0 : i32
    %2 = arith.cmpi ne, %1, %c0_i32_0 : i32
    scf.if %2 {
      %cst_45 = arith.constant -1.000000e+30 : f32
      %81 = vector.broadcast %cst_45 : f32 to vector<1x1xf32>
      %c0_46 = arith.constant 0 : index
      %c0_47 = arith.constant 0 : index
      %c0_48 = arith.constant 0 : index
      %82 = vector.load %arg12[%c0_46, %c0_47, %c0_48] : memref<1x1x1xf32, #tpu.memory_space<vmem>>, vector<1x1x1xf32>
      %83 = vector.shape_cast %82 : vector<1x1x1xf32> to vector<1x1xf32>
      %84 = vector.shape_cast %81 : vector<1x1xf32> to vector<1x1x1xf32>
      tpu.vector_store %arg12[%c0_46, %c0_47, %c0_48], %84 {strides = array<i32>} : memref<1x1x1xf32, #tpu.memory_space<vmem>>, vector<1x1x1xf32>,
      %cst_49 = arith.constant 0.000000e+00 : f32
      %85 = vector.broadcast %cst_49 : f32 to vector<1x3xf32>
      %c0_50 = arith.constant 0 : index
      %c0_51 = arith.constant 0 : index
      %c0_52 = arith.constant 0 : index
      %86 = vector.load %arg11[%c0_50, %c0_51, %c0_52] : memref<1x1x3xf32, #tpu.memory_space<vmem>>, vector<1x1x3xf32>
      %87 = vector.shape_cast %86 : vector<1x1x3xf32> to vector<1x3xf32>
      %88 = vector.shape_cast %85 : vector<1x3xf32> to vector<1x1x3xf32>
      tpu.vector_store %arg11[%c0_50, %c0_51, %c0_52], %88 {strides = array<i32>} : memref<1x1x3xf32, #tpu.memory_space<vmem>>, vector<1x1x3xf32>,
      %cst_53 = arith.constant 0.000000e+00 : f32
      %89 = vector.broadcast %cst_53 : f32 to vector<16x3xf32>
      %c0_54 = arith.constant 0 : index
      %c0_55 = arith.constant 0 : index
      %c0_56 = arith.constant 0 : index
      %90 = vector.load %arg10[%c0_54, %c0_55, %c0_56] : memref<1x16x3xf32, #tpu.memory_space<vmem>>, vector<1x16x3xf32>
      %91 = vector.shape_cast %90 : vector<1x16x3xf32> to vector<16x3xf32>
      %92 = vector.shape_cast %89 : vector<16x3xf32> to vector<1x16x3xf32>
      tpu.vector_store %arg10[%c0_54, %c0_55, %c0_56], %92 {strides = array<i32>} : memref<1x16x3xf32, #tpu.memory_space<vmem>>, vector<1x16x3xf32>,
    } else {
    }
    %c0 = arith.constant 0 : index
    %c0_1 = arith.constant 0 : index
    %3 = vector.load %arg2[%c0, %c0_1] : memref<8x128xf32, #tpu.memory_space<vmem>>, vector<8x128xf32>
    %c0_2 = arith.constant 0 : index
    %c0_3 = arith.constant 0 : index
    %4 = vector.load %arg3[%c0_2, %c0_3] : memref<8x1xi32, #tpu.memory_space<vmem>>, vector<8x1xi32>
    %c0_4 = arith.constant 0 : index
    %c0_5 = arith.constant 0 : index
    %5 = vector.load %arg4[%c0_4, %c0_5] : memref<128x16xf32, #tpu.memory_space<vmem>>, vector<128x16xf32>
    %cst = arith.constant dense<0.000000e+00> : vector<8x16xf32>
    %6 = tpu.matmul %3, %5, %cst {dimension_numbers = #tpu.dot_dimension_numbers<[1], [0], [0], [1], [0, 0, 1, 1], [], []>, precision = #tpu.contract_precision<fp32>} : vector<8x128xf32>, vector<128x16xf32>, vector<8x16xf32> -> vector<8x16xf32>
    %c0_6 = arith.constant 0 : index
    %c0_7 = arith.constant 0 : index
    %7 = vector.load %arg5[%c0_6, %c0_7] : memref<1x16xf32, #tpu.memory_space<vmem>>, vector<1x16xf32>
    %8 = vector.broadcast %7 : vector<1x16xf32> to vector<8x16xf32>
    %9 = arith.addf %6, %8 : vector<8x16xf32>
    %cst_8 = arith.constant 0.000000e+00 : f32
    %10 = vector.broadcast %cst_8 : f32 to vector<8x16xf32>
    %11 = arith.maximumf %9, %10 : vector<8x16xf32>
    %c0_9 = arith.constant 0 : index
    %c0_10 = arith.constant 0 : index
    %12 = vector.load %arg6[%c0_9, %c0_10] : memref<16x8xf32, #tpu.memory_space<vmem>>, vector<16x8xf32>
    %cst_11 = arith.constant dense<0.000000e+00> : vector<8x8xf32>
    %13 = tpu.matmul %11, %12, %cst_11 {dimension_numbers = #tpu.dot_dimension_numbers<[1], [0], [0], [1], [0, 0, 1, 1], [], []>, precision = #tpu.contract_precision<fp32>} : vector<8x16xf32>, vector<16x8xf32>, vector<8x8xf32> -> vector<8x8xf32>
    %c0_12 = arith.constant 0 : index
    %c0_13 = arith.constant 0 : index
    %14 = vector.load %arg7[%c0_12, %c0_13] : memref<1x8xf32, #tpu.memory_space<vmem>>, vector<1x8xf32>
    %15 = vector.broadcast %14 : vector<1x8xf32> to vector<8x8xf32>
    %16 = arith.addf %13, %15 : vector<8x8xf32>
    %17 = vector.extract_strided_slice %16 {offsets = [0, 0], sizes = [8, 4], strides = [1, 1]} : vector<8x8xf32> to vector<8x4xf32>
    %18 = math.tanh %17 : vector<8x4xf32>
    %19 = vector.extract_strided_slice %16 {offsets = [0, 4], sizes = [8, 4], strides = [1, 1]} : vector<8x8xf32> to vector<8x4xf32>
    %cst_14 = arith.constant 5.000000e-01 : f32
    %20 = vector.broadcast %cst_14 : f32 to vector<8x4xf32>
    %21 = arith.mulf %20, %19 : vector<8x4xf32>
    %22 = math.tanh %21 : vector<8x4xf32>
    %cst_15 = arith.constant 1.000000e+00 : f32
    %23 = vector.broadcast %cst_15 : f32 to vector<8x4xf32>
    %24 = arith.addf %22, %23 : vector<8x4xf32>
    %cst_16 = arith.constant 5.000000e-01 : f32
    %25 = vector.broadcast %cst_16 : f32 to vector<8x4xf32>
    %26 = arith.mulf %25, %24 : vector<8x4xf32>
    %27 = arith.mulf %18, %26 : vector<8x4xf32>
    %c0_17 = arith.constant 0 : index
    %c0_18 = arith.constant 0 : index
    %28 = vector.load %arg8[%c0_17, %c0_18] : memref<1x4xf32, #tpu.memory_space<vmem>>, vector<1x4xf32>
    %29 = vector.broadcast %28 : vector<1x4xf32> to vector<8x4xf32>
    %30 = arith.mulf %27, %29 : vector<8x4xf32>
    %cst_19 = arith.constant dense<0.000000e+00> : vector<8xf32>
    %31 = vector.multi_reduction <add>, %30, %cst_19 [1] : vector<8x4xf32> to vector<8xf32>
    %32 = vector.shape_cast %31 : vector<8xf32> to vector<8x1xf32>
    %c0_20 = arith.constant 0 : index
    %c0_21 = arith.constant 0 : index
    %33 = vector.load %arg9[%c0_20, %c0_21] : memref<1x1xf32, #tpu.memory_space<vmem>>, vector<1x1xf32>
    %34 = vector.broadcast %33 : vector<1x1xf32> to vector<8x1xf32>
    %35 = arith.addf %32, %34 : vector<8x1xf32>
    %36 = tpu.iota {dimensions = array<i32: 1>} : vector<8x3xi32>
    %37 = vector.broadcast %4 : vector<8x1xi32> to vector<8x3xi32>
    %38 = arith.cmpi eq, %36, %37 : vector<8x3xi32>
    %39 = arith.extui %38 : vector<8x3xi1> to vector<8x3xi32>
    %40 = arith.sitofp %39 : vector<8x3xi32> to vector<8x3xf32>
    %c0_i32_22 = arith.constant 0 : i32
    %41 = vector.broadcast %c0_i32_22 : i32 to vector<8x1xi32>
    %42 = arith.cmpi sge, %4, %41 : vector<8x1xi32>
    %cst_23 = arith.constant -1.000000e+30 : f32
    %43 = vector.broadcast %cst_23 : f32 to vector<8x1xf32>
    %44 = arith.select %42, %35, %43 : vector<8x1xi1>, vector<8x1xf32>
    %cst_24 = arith.constant dense<0xFF800000> : vector<1xf32>
    %45 = vector.multi_reduction <maximumf>, %44, %cst_24 [0] : vector<8x1xf32> to vector<1xf32>
    %46 = vector.shape_cast %45 : vector<1xf32> to vector<1x1xf32>
    %c0_25 = arith.constant 0 : index
    %c0_26 = arith.constant 0 : index
    %c0_27 = arith.constant 0 : index
    %47 = vector.load %arg12[%c0_25, %c0_26, %c0_27] : memref<1x1x1xf32, #tpu.memory_space<vmem>>, vector<1x1x1xf32>
    %48 = vector.shape_cast %47 : vector<1x1x1xf32> to vector<1x1xf32>
    %49 = arith.maximumf %48, %46 : vector<1x1xf32>
    %50 = arith.subf %48, %49 : vector<1x1xf32>
    %51 = math.exp %50 : vector<1x1xf32>
    %52 = vector.broadcast %49 : vector<1x1xf32> to vector<8x1xf32>
    %53 = arith.subf %44, %52 : vector<8x1xf32>
    %54 = math.exp %53 : vector<8x1xf32>
    %c0_28 = arith.constant 0 : index
    %c0_29 = arith.constant 0 : index
    %c0_30 = arith.constant 0 : index
    %55 = vector.load %arg11[%c0_28, %c0_29, %c0_30] : memref<1x1x3xf32, #tpu.memory_space<vmem>>, vector<1x1x3xf32>
    %56 = vector.shape_cast %55 : vector<1x1x3xf32> to vector<1x3xf32>
    %57 = vector.broadcast %51 : vector<1x1xf32> to vector<1x3xf32>
    %58 = arith.mulf %57, %56 : vector<1x3xf32>
    %59 = vector.broadcast %54 : vector<8x1xf32> to vector<8x3xf32>
    %60 = arith.mulf %59, %40 : vector<8x3xf32>
    %cst_31 = arith.constant dense<0.000000e+00> : vector<3xf32>
    %61 = vector.multi_reduction <add>, %60, %cst_31 [0] : vector<8x3xf32> to vector<3xf32>
    %62 = vector.shape_cast %61 : vector<3xf32> to vector<1x3xf32>
    %63 = arith.addf %58, %62 : vector<1x3xf32>
    %c0_32 = arith.constant 0 : index
    %c0_33 = arith.constant 0 : index
    %c0_34 = arith.constant 0 : index
    %64 = vector.load %arg11[%c0_32, %c0_33, %c0_34] : memref<1x1x3xf32, #tpu.memory_space<vmem>>, vector<1x1x3xf32>
    %65 = vector.shape_cast %64 : vector<1x1x3xf32> to vector<1x3xf32>
    %66 = vector.shape_cast %63 : vector<1x3xf32> to vector<1x1x3xf32>
    tpu.vector_store %arg11[%c0_32, %c0_33, %c0_34], %66 {strides = array<i32>} : memref<1x1x3xf32, #tpu.memory_space<vmem>>, vector<1x1x3xf32>,
    %67 = vector.broadcast %54 : vector<8x1xf32> to vector<8x16xf32>
    %68 = arith.mulf %11, %67 : vector<8x16xf32>
    %c0_35 = arith.constant 0 : index
    %c0_36 = arith.constant 0 : index
    %c0_37 = arith.constant 0 : index
    %69 = vector.load %arg10[%c0_35, %c0_36, %c0_37] : memref<1x16x3xf32, #tpu.memory_space<vmem>>, vector<1x16x3xf32>
    %70 = vector.shape_cast %69 : vector<1x16x3xf32> to vector<16x3xf32>
    %71 = vector.broadcast %51 : vector<1x1xf32> to vector<16x3xf32>
    %72 = arith.mulf %71, %70 : vector<16x3xf32>
    %cst_38 = arith.constant dense<0.000000e+00> : vector<16x3xf32>
    %73 = tpu.matmul %68, %40, %cst_38 {dimension_numbers = #tpu.dot_dimension_numbers<[0], [0], [1], [1], [0, 1, 1, 1], [], []>, precision = #tpu.contract_precision<fp32>} : vector<8x16xf32>, vector<8x3xf32>, vector<16x3xf32> -> vector<16x3xf32>
    %74 = arith.addf %72, %73 : vector<16x3xf32>
    %c0_39 = arith.constant 0 : index
    %c0_40 = arith.constant 0 : index
    %c0_41 = arith.constant 0 : index
    %75 = vector.load %arg10[%c0_39, %c0_40, %c0_41] : memref<1x16x3xf32, #tpu.memory_space<vmem>>, vector<1x16x3xf32>
    %76 = vector.shape_cast %75 : vector<1x16x3xf32> to vector<16x3xf32>
    %77 = vector.shape_cast %74 : vector<16x3xf32> to vector<1x16x3xf32>
    tpu.vector_store %arg10[%c0_39, %c0_40, %c0_41], %77 {strides = array<i32>} : memref<1x16x3xf32, #tpu.memory_space<vmem>>, vector<1x16x3xf32>,
    %c0_42 = arith.constant 0 : index
    %c0_43 = arith.constant 0 : index
    %c0_44 = arith.constant 0 : index
    %78 = vector.load %arg12[%c0_42, %c0_43, %c0_44] : memref<1x1x1xf32, #tpu.memory_space<vmem>>, vector<1x1x1xf32>
    %79 = vector.shape_cast %78 : vector<1x1x1xf32> to vector<1x1xf32>
    %80 = vector.shape_cast %49 : vector<1x1xf32> to vector<1x1x1xf32>
    tpu.vector_store %arg12[%c0_42, %c0_43, %c0_44], %80 {strides = array<i32>} : memref<1x1x1xf32, #tpu.memory_space<vmem>>, vector<1x1x1xf32>,
    return
  }
  func.func @transform_0(%arg0: i32, %arg1: i32) -> (i32, i32) {
    %c2_i32 = arith.constant 2 : i32
    %0 = arith.muli %arg0, %c2_i32 : i32
    %1 = arith.addi %0, %arg1 : i32
    %c0_i32 = arith.constant 0 : i32
    %c0_i32_0 = arith.constant 0 : i32
    return %1, %c0_i32 : i32, i32
  }
  func.func @transform_1(%arg0: i32, %arg1: i32) -> (i32, i32) {
    %c2_i32 = arith.constant 2 : i32
    %0 = arith.muli %arg0, %c2_i32 : i32
    %1 = arith.addi %0, %arg1 : i32
    %c0_i32 = arith.constant 0 : i32
    %c0_i32_0 = arith.constant 0 : i32
    return %1, %c0_i32 : i32, i32
  }
  func.func @transform_2(%arg0: i32, %arg1: i32) -> (i32, i32) {
    %c0_i32 = arith.constant 0 : i32
    %c0_i32_0 = arith.constant 0 : i32
    %c0_i32_1 = arith.constant 0 : i32
    return %c0_i32, %c0_i32_0 : i32, i32
  }
  func.func @transform_3(%arg0: i32, %arg1: i32) -> (i32, i32) {
    %c0_i32 = arith.constant 0 : i32
    %c0_i32_0 = arith.constant 0 : i32
    %c0_i32_1 = arith.constant 0 : i32
    return %c0_i32, %c0_i32_0 : i32, i32
  }
  func.func @transform_4(%arg0: i32, %arg1: i32) -> (i32, i32) {
    %c0_i32 = arith.constant 0 : i32
    %c0_i32_0 = arith.constant 0 : i32
    %c0_i32_1 = arith.constant 0 : i32
    return %c0_i32, %c0_i32_0 : i32, i32
  }
  func.func @transform_5(%arg0: i32, %arg1: i32) -> (i32, i32) {
    %c0_i32 = arith.constant 0 : i32
    %c0_i32_0 = arith.constant 0 : i32
    %c0_i32_1 = arith.constant 0 : i32
    return %c0_i32, %c0_i32_0 : i32, i32
  }
  func.func @transform_6(%arg0: i32, %arg1: i32) -> (i32, i32) {
    %c0_i32 = arith.constant 0 : i32
    %c0_i32_0 = arith.constant 0 : i32
    %c0_i32_1 = arith.constant 0 : i32
    return %c0_i32, %c0_i32_0 : i32, i32
  }
  func.func @transform_7(%arg0: i32, %arg1: i32) -> (i32, i32) {
    %c0_i32 = arith.constant 0 : i32
    %c0_i32_0 = arith.constant 0 : i32
    %c0_i32_1 = arith.constant 0 : i32
    return %c0_i32, %c0_i32_0 : i32, i32
  }
  func.func @transform_8(%arg0: i32, %arg1: i32) -> (i32, i32, i32) {
    %c0_i32 = arith.constant 0 : i32
    %c0_i32_0 = arith.constant 0 : i32
    %c0_i32_1 = arith.constant 0 : i32
    return %arg0, %c0_i32, %c0_i32_0 : i32, i32, i32
  }
  func.func @transform_9(%arg0: i32, %arg1: i32) -> (i32, i32, i32) {
    %c0_i32 = arith.constant 0 : i32
    %c0_i32_0 = arith.constant 0 : i32
    %c0_i32_1 = arith.constant 0 : i32
    return %arg0, %c0_i32, %c0_i32_0 : i32, i32, i32
  }
  func.func @transform_10(%arg0: i32, %arg1: i32) -> (i32, i32, i32) {
    %c0_i32 = arith.constant 0 : i32
    %c0_i32_0 = arith.constant 0 : i32
    %c0_i32_1 = arith.constant 0 : i32
    return %arg0, %c0_i32, %c0_i32_0 : i32, i32, i32
  }
}

</mosaic_0001>

<bundles_post_ra>
// kernel: tpu_custom_call.1
= control target key start
LH: loop header
LB: loop body
LE: loop exit
PB: predicated region body
PF: predicated region fallthrough
CT: control target
= control target key end

     0   :  { %s2028_s0 = inlined_call_operand.vmem [shape: f32[16,128], index: 0, kind: input, shape index: {}]   ;;  %s2029_s1 = inlined_call_operand.vmem [shape: s32[16,1], index: 1, kind: input, shape index: {}]   ;;  %s2030_s2 = inlined_call_operand.vmem [shape: f32[128,16], index: 2, kind: input, shape index: {}]   ;;  %s2031_s3 = inlined_call_operand.vmem [shape: f32[1,16], index: 3, kind: input, shape index: {}]   ;;  %s2032_s4 = inlined_call_operand.vmem [shape: f32[16,8], index: 4, kind: input, shape index: {}]   ;;  %s2033_s5 = inlined_call_operand.vmem [shape: f32[1,8], index: 5, kind: input, shape index: {}]   ;;  %s2034_s6 = inlined_call_operand.vmem [shape: f32[1,4], index: 6, kind: input, shape index: {}]   ;;  %s2035_s7 = inlined_call_operand.<no memory space> [shape: f32[1,1], index: 7, kind: input, shape index: {}]   ;;  %s2036_s8 = inlined_call_operand.vmem [shape: f32[1,16,3], index: 8, kind: output, shape index: {0}]   ;;  %s2037_s9 = inlined_call_operand.hbm [shape: f32[1,1,3], index: 9, kind: output, shape index: {1}]   ;;  %s2038_s10 = inlined_call_operand.hbm [shape: f32[1,1,1], index: 10, kind: output, shape index: {2}]  }
   0x1   :  { %v16_v0 = vstv %s2035_s7 }
   0x2   :  { %17 = vst [vmem:[#allocation2] sm:$0x1] %v16_v0 }
   0x3   :  { %18 = vsyncpa [#allocation4], 0 }
   0x4   :  { %19 = vsyncpa [#allocation6], 0  ;;  %s1635_s15 = smov 0   ;;  %s1637_s16 = smov 0  }
   0x5   :  { %s1639_s17 = smov 0  }
   0x6 LB: > { %s1404_s7 = sadd.s32 4294967295, %s1567_s17   ;;  %s34_s18 = sadd.s32 1, %s1563_s16  ;;  %s1567_s17 = sphi %s1639_s17, %s25_s17   ;;  %s1563_s16 = sphi %s1637_s16, %s2041_s16   ;;  %s1559_s15 = sphi %s1635_s15, %s2040_s15  }
   0x7   : > { %p35_p0 = scmp.ge.s32.totalorder %s34_s18, 2  ;;  %p1407_p1 = scmp.ge.s32.totalorder %s1567_s17, 1 }
   0x8   : > { %p357_p2 = scmp.lt.s32.totalorder %s1567_s17, 3 }
   0x9   : > { %s2043_s18 = smov (%p35_p0, %s34_s18), 0 }
   0xa   : > { %p358_p3 = pnand %p1407_p1, %p357_p2 }
   0xb   : > { %p404_p4 = scmp.lt.s32.totalorder (!%p358_p3), %s1559_s15, 1  ;;  %p1410_p5 = scmp.ne.s32.totalorder (!%p358_p3), %s1559_s15, 0 }
   0xc   : > { %361 = sbr.rel (%p358_p3) target bundleno = 1124 (0x464), region = 52 }
  0x11   : > { %s405_s19 = scalar_select %p404_p4, %s1559_s15, 1 }
  0x12   : > { %426 = sbr.rel (%p1410_p5) target bundleno = 28 (0x1c), region = 56 }
  0x13   : > { %s1408_s20 = sshll.u32 %s405_s19, 3 }
  0x14   : > { %s1657_s23 = scalar_lea.vmem %s2028_s0, %s1408_s20  ;;  %s1662_s26 = scalar_lea.vmem %s2029_s1, %s1408_s20 }
  0x17   : > { %vm427_vm0 = vcmask 0   ;;  %vm429_vm1 = vcmask 16384   ;;  %v1569_v1 = vmov -1e+30   ;;  %vm431_vm2 = vcmask 23552  }
  0x18   : > { %428 = vst.msk [vmem:[#allocation5] sm:$0x1] %vm427_vm0, %v1569_v1  ;;  %v1570_v2 = vmov 0.0  }
  0x19   : > { %430 = vst.msk [vmem:[#allocation3] sm:$0x1] %vm429_vm1, %v1570_v2 }
  0x1a   : > { %432 = vst.msk [vmem:[%s2036_s8] sm:$0xff] %vm431_vm2, %v1570_v2 }
  0x1b   : > { %433 = vst.msk [vmem:[%s2036_s8 + $0x8] sm:$0xff] %vm431_vm2, %v1570_v2 }
  0x1c PF: > { %v451_v3 = vld [vmem:[%s2030_s2 + $0x78] sm:$0xff]  ;;  %v450_v4 = vld [vmem:[%s2030_s2 + $0x70] sm:$0xff]  ;;  %v449_v5 = vld [vmem:[%s2030_s2 + $0x68] sm:$0xff]  ;;  %vm804_vm3 = vcmask 130048   ;;  %s1571_s24 = smov 124   ;;  %vm982_vm4 = vcmask 31744  }
  0x1d   : > { %v1679_v6 = vand.u32 4294901760, %v451_v3  ;;  %v1681_v7 = vand.u32 4294901760, %v450_v4  ;;  %v1683_v8 = vand.u32 4294901760, %v449_v5  ;;  %v448_v9 = vld [vmem:[%s2030_s2 + $0x60] sm:$0xff]  ;;  %v447_v10 = vld [vmem:[%s2030_s2 + $0x58] sm:$0xff]  ;;  %v446_v11 = vld [vmem:[%s2030_s2 + $0x50] sm:$0xff] }
  0x1e   : > { %v1694_v12 = vand.u32 4294901760, %v448_v9  ;;  %v1696_v13 = vand.u32 4294901760, %v447_v10  ;;  %v1698_v14 = vand.u32 4294901760, %v446_v11  ;;  %v445_v15 = vld [vmem:[%s2030_s2 + $0x48] sm:$0xff]  ;;  %v444_v16 = vld [vmem:[%s2030_s2 + $0x40] sm:$0xff]  ;;  %v443_v24 = vld [vmem:[%s2030_s2 + $0x38] sm:$0xff] }
  0x1f   : > { %457 = vmatpush.msra.mxu0 %v1679_v6  ;;  %v1708_v17 = vsub.f32 %v451_v3, %v1679_v6  ;;  %v1711_v18 = vsub.f32 %v450_v4, %v1681_v7  ;;  %v1714_v19 = vsub.f32 %v449_v5, %v1683_v8  ;;  %v1716_v20 = vand.u32 4294901760, %v445_v15  ;;  %653 = vmatpush.msra.mxu3 %v1679_v6  ;;  %v442_v37 = vld [vmem:[%s2030_s2 + $0x30] sm:$0xff]  ;;  %v441_v38 = vld [vmem:[%s2030_s2 + $0x28] sm:$0xff]  ;;  %v440_v45 = vld [vmem:[%s2030_s2 + $0x20] sm:$0xff]  ;;  %p1983_p6 = scmp.eq.s32.totalorder %s1404_s7, 1  ;;  %s1575_s28 = smov [#allocation5]  }
  0x20   : > { %v1720_v21 = vsub.f32 %v448_v9, %v1694_v12  ;;  %v1723_v22 = vsub.f32 %v447_v10, %v1696_v13  ;;  %v1725_v23 = vand.u32 4294901760, %v444_v16  ;;  %v1735_v28 = vsub.f32 %v446_v11, %v1698_v14  ;;  %v439_v50 = vld [vmem:[%s2030_s2 + $0x18] sm:$0xff]  ;;  %v438_v56 = vld [vmem:[%s2030_s2 + $0x10] sm:$0xff]  ;;  %v437_v0 = vld [vmem:[%s2030_s2 + $0x8] sm:$0xff]  ;;  %s1305_s29 = sshll.u32 %s1575_s28, 4  ;;  %s1307_s12 = sshll.u32 %s2038_s10, 4  ;;  %s1306_s29 = int_to_ptr.vmem [resolvable:$true] %s1305_s29  ;;  %s1308_s12 = int_to_ptr.hbm [resolvable:$true] %s1307_s12 }
  0x21   : > { %459 = vmatpush.msra.mxu0 %v1681_v7  ;;  %v499_v25 = vand.u32 4294901760, %v1708_v17  ;;  %v505_v26 = vand.u32 4294901760, %v1711_v18  ;;  %v511_v27 = vand.u32 4294901760, %v1714_v19  ;;  %600 = vmatpush.msra.mxu2 %v1708_v17  ;;  %v1741_v31 = vsub.f32 %v445_v15, %v1716_v20  ;;  %v436_v5 = vld [vmem:[%s2030_s2] sm:$0xff]  ;;  %s1576_s7 = smov [#allocation3]   ;;  %s1294_s15 = sshll.u32 %s2037_s9, 4  ;;  %s1295_s15 = int_to_ptr.hbm [resolvable:$true] %s1294_s15 }
  0x22   : > { %v517_v29 = vand.u32 4294901760, %v1720_v21  ;;  %v523_v30 = vand.u32 4294901760, %v1723_v22  ;;  %655 = vmatpush.msra.mxu3 %v1681_v7  ;;  %v1754_v35 = vand.u32 4294901760, %v443_v24  ;;  %v1758_v36 = vsub.f32 %v444_v16, %v1725_v23 }
  0x23   : > { %v500_v32 = vsub.f32 %v1708_v17, %v499_v25  ;;  %461 = vmatpush.msra.mxu0 %v1683_v8  ;;  %v506_v33 = vsub.f32 %v1711_v18, %v505_v26  ;;  %v512_v34 = vsub.f32 %v1714_v19, %v511_v27  ;;  %603 = vmatpush.msra.mxu2 %v1711_v18  ;;  %v529_v42 = vand.u32 4294901760, %v1735_v28 }
  0x24   : > { %657 = vmatpush.msra.mxu3 %v1683_v8  ;;  %v518_v41 = vsub.f32 %v1720_v21, %v517_v29  ;;  %v524_v43 = vsub.f32 %v1723_v22, %v523_v30  ;;  %v535_v44 = vand.u32 4294901760, %v1741_v31  ;;  %v1782_v47 = vand.u32 4294901760, %v442_v37 }
  0x25   : > { %v501_v39 = vand.u32 4294901760, %v500_v32  ;;  %v507_v40 = vand.u32 4294901760, %v506_v33  ;;  %463 = vmatpush.msra.mxu0 %v1694_v12  ;;  %606 = vmatpush.msra.mxu2 %v1714_v19  ;;  %v513_v46 = vand.u32 4294901760, %v512_v34  ;;  %v1785_v48 = vsub.f32 %v443_v24, %v1754_v35  ;;  %v434_v32 = vld [vmem:[%s1657_s23] sm:$0xff]  ;;  %s1292_s23 = sshll.u32 %s1576_s7, 4  ;;  %s1293_s23 = int_to_ptr.vmem [resolvable:$true] %s1292_s23 }
  0x26   : > { %659 = vmatpush.msra.mxu3 %v1694_v12  ;;  %v1787_v49 = vand.u32 4294901760, %v441_v38  ;;  %v541_v51 = vand.u32 4294901760, %v1758_v36  ;;  %v519_v52 = vand.u32 4294901760, %v518_v41  ;;  %v530_v53 = vsub.f32 %v1735_v28, %v529_v42 }
  0x27   : > { %502 = vmatpush.msra.mxu1 %v501_v39  ;;  %465 = vmatpush.msra.mxu0 %v1696_v13  ;;  %v1800_v54 = vsub.f32 %v442_v37, %v1782_v47  ;;  %v1802_v55 = vand.u32 4294901760, %v440_v45  ;;  %v1807_v57 = vand.u32 4294901760, %v439_v50  ;;  %v525_v58 = vand.u32 4294901760, %v524_v43 }
  0x28   : > { %609 = vmatpush.msra.mxu2 %v1720_v21  ;;  %661 = vmatpush.msra.mxu3 %v1696_v13  ;;  %v536_v59 = vsub.f32 %v1741_v31, %v535_v44  ;;  %v547_v60 = vand.u32 4294901760, %v1785_v48  ;;  %v1817_v61 = vsub.f32 %v441_v38, %v1787_v49  ;;  %v542_v62 = vsub.f32 %v1758_v36, %v541_v51 }
  0x29   : > { %508 = vmatpush.msra.mxu1 %v507_v40  ;;  %467 = vmatpush.msra.mxu0 %v1698_v14  ;;  %v1822_v63 = vand.u32 4294901760, %v438_v56  ;;  %v531_v1 = vand.u32 4294901760, %v530_v53  ;;  %v553_v2 = vand.u32 4294901760, %v1800_v54  ;;  %v1832_v3 = vsub.f32 %v440_v45, %v1802_v55 }
  0x2a   : > { %612 = vmatpush.msra.mxu2 %v1723_v22  ;;  %663 = vmatpush.msra.mxu3 %v1698_v14  ;;  %v1835_v4 = vsub.f32 %v439_v50, %v1807_v57  ;;  %v537_v9 = vand.u32 4294901760, %v536_v59  ;;  %v548_v10 = vsub.f32 %v1785_v48, %v547_v60  ;;  %v559_v11 = vand.u32 4294901760, %v1817_v61 }
  0x2b   : > { %514 = vmatpush.msra.mxu1 %v513_v46  ;;  %469 = vmatpush.msra.mxu0 %v1716_v20  ;;  %v1847_v15 = vand.u32 4294901760, %v437_v0  ;;  %v543_v16 = vand.u32 4294901760, %v542_v62  ;;  %v1850_v24 = vsub.f32 %v438_v56, %v1822_v63  ;;  %v554_v33 = vsub.f32 %v1800_v54, %v553_v2 }
  0x2c   : > { %615 = vmatpush.msra.mxu2 %v1735_v28  ;;  %665 = vmatpush.msra.mxu3 %v1716_v20  ;;  %v565_v34 = vand.u32 4294901760, %v1832_v3  ;;  %v1860_v37 = vand.u32 4294901760, %v436_v5  ;;  %v1862_v38 = vand.u32 4294901760, %v434_v32  ;;  %v571_v39 = vand.u32 4294901760, %v1835_v4 }
  0x2d   : > { %520 = vmatpush.msra.mxu1 %v519_v52  ;;  %471 = vmatpush.msra.mxu0 %v1725_v23  ;;  %v549_v40 = vand.u32 4294901760, %v548_v10  ;;  %v560_v41 = vsub.f32 %v1817_v61, %v559_v11  ;;  %v1872_v43 = vsub.f32 %v437_v0, %v1847_v15  ;;  %v555_v46 = vand.u32 4294901760, %v554_v33 }
  0x2e   : > { %618 = vmatpush.msra.mxu2 %v1741_v31  ;;  %667 = vmatpush.msra.mxu3 %v1725_v23  ;;  %v489_v45 = vsub.f32 %v434_v32, %v1862_v38  ;;  %v566_v50 = vsub.f32 %v1832_v3, %v565_v34  ;;  %v577_v52 = vand.u32 4294901760, %v1850_v24  ;;  %v1883_v53 = vsub.f32 %v436_v5, %v1860_v37 }
  0x2f   : > { %526 = vmatpush.msra.mxu1 %v525_v58  ;;  %473 = vmatpush.msra.mxu0 %v1754_v35  ;;  %v561_v56 = vand.u32 4294901760, %v560_v41  ;;  %v572_v58 = vsub.f32 %v1835_v4, %v571_v39  ;;  %v583_v59 = vand.u32 4294901760, %v1872_v43  ;;  %vm1001_vm6 = vcmask 7168  }
  0x30   : > { %621 = vmatpush.msra.mxu2 %v1758_v36  ;;  %669 = vmatpush.msra.mxu3 %v1754_v35  ;;  %v490_v62 = vand.u32 4294901760, %v489_v45  ;;  %v567_v0 = vand.u32 4294901760, %v566_v50  ;;  %v589_v5 = vand.u32 4294901760, %v1883_v53  ;;  %vm1275_vm7 = vcmask 0  }
  0x31   : > { %532 = vmatpush.msra.mxu1 %v531_v1  ;;  %475 = vmatpush.msra.mxu0 %v1782_v47  ;;  %v578_v1 = vsub.f32 %v1850_v24, %v577_v52  ;;  %v584_v10 = vsub.f32 %v1872_v43, %v583_v59  ;;  %vm1087_vm9 = vcmask 64512   ;;  %vm1034_vm10 = vcmask 23552  }
  0x32   : > { %624 = vmatpush.msra.mxu2 %v1785_v48  ;;  %671 = vmatpush.msra.mxu3 %v1782_v47  ;;  %v590_v33 = vsub.f32 %v1883_v53, %v589_v5  ;;  %vm1043_vm11 = vcmask 16384  }
  0x33   : > { %538 = vmatpush.msra.mxu1 %v537_v9  ;;  %477 = vmatpush.msra.mxu0 %v1787_v49  ;;  %v573_v9 = vand.u32 4294901760, %v572_v58  ;;  %v579_v32 = vand.u32 4294901760, %v578_v1 }
  0x34   : > { %627 = vmatpush.msra.mxu2 %v1800_v54  ;;  %673 = vmatpush.msra.mxu3 %v1787_v49 }
  0x35   : > { %544 = vmatpush.msra.mxu1 %v543_v16  ;;  %479 = vmatpush.msra.mxu0 %v1802_v55  ;;  %v491_v16 = vsub.f32 %v489_v45, %v490_v62 }
  0x36   : > { %630 = vmatpush.msra.mxu2 %v1817_v61  ;;  %675 = vmatpush.msra.mxu3 %v1802_v55 }
  0x37   : > { %550 = vmatpush.msra.mxu1 %v549_v40  ;;  %481 = vmatpush.msra.mxu0 %v1807_v57  ;;  %v585_v40 = vand.u32 4294901760, %v584_v10  ;;  %v492_v41 = vand.u32 4294901760, %v491_v16  ;;  %v1472_v10 = vld [vmem:[#allocation2] ss:$0 sm:$0xff] }
  0x38   : > { %633 = vmatpush.msra.mxu2 %v1832_v3  ;;  %677 = vmatpush.msra.mxu3 %v1807_v57 }
  0x39   : > { %556 = vmatpush.msra.mxu1 %v555_v46  ;;  %483 = vmatpush.msra.mxu0 %v1822_v63  ;;  %v591_v46 = vand.u32 4294901760, %v590_v33 }
  0x3a   : > { %636 = vmatpush.msra.mxu2 %v1835_v4  ;;  %679 = vmatpush.msra.mxu3 %v1822_v63 }
  0x3b   : > { %562 = vmatpush.msra.mxu1 %v561_v56  ;;  %485 = vmatpush.msra.mxu0 %v1847_v15  ;;  %v1471_v56 = vld [vmem:[%s2034_s6] ss:$0 sm:$0xff] }
  0x3c   : > { %639 = vmatpush.msra.mxu2 %v1850_v24  ;;  %681 = vmatpush.msra.mxu3 %v1847_v15 }
  0x3d   : > { %568 = vmatpush.msra.mxu1 %v567_v0  ;;  %487 = vmatpush.msra.mxu0 %v1860_v37 }
  0x3e   : > { %642 = vmatpush.msra.mxu2 %v1872_v43  ;;  %683 = vmatpush.msra.mxu3 %v1860_v37 }
  0x3f   : > { %694 = vmatpush.msrb.mxu0 %v499_v25  ;;  %574 = vmatpush.msra.mxu1 %v573_v9  ;;  %v435_v9 = vld [vmem:[%s1662_s26] sm:$0xff] }
  0x40   : > { %645 = vmatpush.msra.mxu2 %v1883_v53  ;;  %687 = vmatmul.f32.vlgmr.msra.gmra.mxu3 %v490_v62  ;;  %vm999_vm5 = vcmp.ge.s32.totalorder %v435_v9, 0 }
  0x41   : > { %698 = vmatpush.msrb.mxu0 %v505_v26  ;;  %580 = vmatpush.msra.mxu1 %v579_v32 }
  0x42   : > { %648 = vmatmul.f32.vlgmr.msra.gmra.mxu2 %v489_v45  ;;  %493 = vmatmul.f32.vlgmr.msra.gmra.mxu0 %v492_v41 }
  0x43   : > { %702 = vmatpush.msrb.mxu0 %v511_v27  ;;  %586 = vmatpush.msra.mxu1 %v585_v40 }
  0x45   : > { %706 = vmatpush.msrb.mxu0 %v517_v29  ;;  %592 = vmatpush.msra.mxu1 %v591_v46 }
  0x46   : > { %594 = vmatmul.f32.vlgmr.msra.gmra.mxu1 %v1862_v38 }
  0x47   : > { %761 = vmatpush.msrb.mxu1 %v1679_v6  ;;  %710 = vmatpush.msrb.mxu0 %v523_v30  ;;  %v799_v6 = vld [vmem:[%s2032_s4 + $0x8] sm:$0xff] }
  0x49   : > { %763 = vmatpush.msrb.mxu1 %v1681_v7  ;;  %714 = vmatpush.msrb.mxu0 %v529_v42  ;;  %v822_v7 = vand.u32 4294901760, %v799_v6 }
  0x4b   : > { %765 = vmatpush.msrb.mxu1 %v1683_v8  ;;  %718 = vmatpush.msrb.mxu0 %v535_v44  ;;  %v798_v8 = vld [vmem:[%s2032_s4] sm:$0xff] }
  0x4c   : > { %823 = vmatpush.msrb.mxu2 %v822_v7 }
  0x4d   : > { %767 = vmatpush.msrb.mxu1 %v1694_v12  ;;  %722 = vmatpush.msrb.mxu0 %v541_v51  ;;  %v850_v12 = vsub.f32 %v799_v6, %v822_v7 }
  0x4f   : > { %769 = vmatpush.msrb.mxu1 %v1696_v13  ;;  %726 = vmatpush.msrb.mxu0 %v547_v60  ;;  %v824_v13 = vand.u32 4294901760, %v798_v8 }
  0x51   : > { %771 = vmatpush.msrb.mxu1 %v1698_v14  ;;  %730 = vmatpush.msrb.mxu0 %v553_v2  ;;  %v851_v14 = vand.u32 4294901760, %v850_v12  ;;  %v856_v17 = vsub.f32 %v798_v8, %v824_v13  ;;  %v1470_v2 = vld [vmem:[%s2033_s5] ss:$0 sm:$0xff] }
  0x52   : > { %825 = vmatpush.msrb.mxu2 %v824_v13 }
  0x53   : > { %773 = vmatpush.msrb.mxu1 %v1716_v20  ;;  %734 = vmatpush.msrb.mxu0 %v559_v11  ;;  %v852_v18 = vsub.f32 %v850_v12, %v851_v14  ;;  %v857_v19 = vand.u32 4294901760, %v856_v17 }
  0x54   : > { %882 = vmatpush.msra.mxu2 %v850_v12  ;;  %v1009_v12 = vld [vmem:[#allocation5] sm:$0x1] }
  0x55   : > { %775 = vmatpush.msrb.mxu1 %v1725_v23  ;;  %738 = vmatpush.msrb.mxu0 %v565_v34  ;;  %v853_v20 = vand.u32 4294901760, %v852_v18  ;;  %v858_v21 = vsub.f32 %v856_v17, %v857_v19  ;;  %v1469_v23 = vld [vmem:[%s2031_s3] ss:$0 sm:$0xff] }
  0x56   : > { %885 = vmatpush.msra.mxu2 %v856_v17 }
  0x57   : > { %777 = vmatpush.msrb.mxu1 %v1754_v35  ;;  %742 = vmatpush.msrb.mxu0 %v571_v39  ;;  %v859_v22 = vand.u32 4294901760, %v858_v21 }
  0x58   : > { %854 = vmatpush.msrb.mxu3 %v853_v20 }
  0x59   : > { %779 = vmatpush.msrb.mxu1 %v1782_v47  ;;  %746 = vmatpush.msrb.mxu0 %v577_v52 }
  0x5a   : > { %860 = vmatpush.msrb.mxu3 %v859_v22 }
  0x5b   : > { %781 = vmatpush.msrb.mxu1 %v1787_v49  ;;  %750 = vmatpush.msrb.mxu0 %v583_v59 }
  0x5c   : > { %907 = vmatpush.msra.mxu3 %v822_v7 }
  0x5d   : > { %783 = vmatpush.msrb.mxu1 %v1802_v55  ;;  %754 = vmatpush.msrb.mxu0 %v589_v5  ;;  %v1572_v5 = vmov 0  }
  0x5e   : > { %756 = vmatmul.f32.vlgmr.msrb.gmra.mxu0 %v1862_v38  ;;  %909 = vmatpush.msra.mxu3 %v824_v13 }
  0x5f   : > { %785 = vmatpush.msrb.mxu1 %v1807_v57  ;;  %1466 = vset.pattern.permute.xlu1 %v1572_v5 }
  0x60   : > { %1468 = vset.pattern.permute.xlu0 %v1572_v5 }
  0x61   : > { %787 = vmatpush.msrb.mxu1 %v1822_v63 }
  0x63   : > { %789 = vmatpush.msrb.mxu1 %v1847_v15 }
  0x65   : > { %791 = vmatpush.msrb.mxu1 %v1860_v37 }
  0x66   : > { %793 = vmatmul.f32.vlgmr.msrb.gmra.mxu1 %v1862_v38 }
  0xbf   : > { %v494_v25 = vpop.f32.mrf.mxu0 }
  0xc0   : > { %v495_v26 = vadd.f32 %v1469_v23, %v494_v25 }
  0xc3   : > { %v595_v27 = vpop.f32.mrf.mxu1  ;;  %v688_v31 = vpop.f32.mrf.mxu3 }
  0xc4   : > { %v596_v28 = vadd.f32 %v595_v27, %v495_v26 }
  0xc5   : > { %v649_v29 = vpop.f32.mrf.mxu2 }
  0xc6   : > { %v650_v30 = vadd.f32 %v649_v29, %v596_v28  ;;  %v991_v28 = vlaneseq }
  0xc8   : > { %v689_v35 = vadd.f32 %v688_v31, %v650_v30  ;;  %v992_v29 = vand.u32 127, %v991_v28  ;;  %v1573_v31 = vmov 0.0  }
  0xdb   : > { %v757_v36 = vpop.f32.mrf.mxu0 }
  0xdc   : > { %v758_v42 = vadd.f32 %v757_v36, %v689_v35  ;;  %v1574_v36 = vmov 1.0  }
  0xe3   : > { %v794_v44 = vpop.f32.mrf.mxu1 }
  0xe4   : > { %v1966_v47 = vadd.f32 %v794_v44, %v758_v42 }
  0xe6   : > { %v797_v48 = vmax.f32 %v1966_v47, 0.0 }
  0xe8   : > { %v806_v49 = vsel %vm804_vm3, %v797_v48, 0 }
  0xe9   : > { %v826_v51 = vand.u32 4294901760, %v806_v49 }
  0xeb   : > { %v827_v54 = vsub.f32 %v806_v49, %v826_v51  ;;  %862 = vmatmul.f32.vlgmr.msrb.gmra.mxu3 %v826_v51 }
  0xec   : > { %959 = vmatpush.msrb.mxu3 %v822_v7 }
  0xed   : > { %v828_v55 = vand.u32 4294901760, %v827_v54 }
  0xee   : > { %961 = vmatpush.msrb.mxu3 %v824_v13 }
  0xef   : > { %v829_v57 = vsub.f32 %v827_v54, %v828_v55 }
  0xf1   : > { %v830_v60 = vand.u32 4294901760, %v829_v57 }
  0xf3   : > { %831 = vmatmul.f32.vlgmr.msrb.gmra.mxu2 %v830_v60  ;;  %913 = vmatmul.f32.vlgmr.msra.gmra.mxu3 %v828_v55 }
  0xf4   : > { %934 = vmatpush.msrb.mxu2 %v851_v14 }
  0xf6   : > { %938 = vmatpush.msrb.mxu2 %v857_v19 }
  0xfb   : > { %888 = vmatmul.f32.vlgmr.msra.gmra.mxu2 %v827_v54  ;;  %963 = vmatmul.f32.vlgmr.msrb.gmra.mxu3 %v826_v51 }
 0x103   : > { %940 = vmatmul.f32.vlgmr.msrb.gmra.mxu2 %v826_v51 }
 0x16e   : > { %v863_v61 = vpop.f32.mrf.mxu3 }
 0x176   : > { %v832_v63 = vpop.f32.mrf.mxu2  ;;  %v914_v4 = vpop.f32.mrf.mxu3 }
 0x177   : > { %v833_v3 = vadd.f32 %v1470_v2, %v832_v63 }
 0x179   : > { %v864_v15 = vadd.f32 %v863_v61, %v833_v3 }
 0x17e   : > { %v889_v11 = vpop.f32.mrf.mxu2  ;;  %v964_v39 = vpop.f32.mrf.mxu3 }
 0x17f   : > { %v890_v24 = vadd.f32 %v889_v11, %v864_v15 }
 0x181   : > { %v915_v34 = vadd.f32 %v914_v4, %v890_v24 }
 0x186   : > { %v941_v37 = vpop.f32.mrf.mxu2 }
 0x187   : > { %v942_v38 = vadd.f32 %v941_v37, %v915_v34 }
 0x189   : > { %v965_v43 = vadd.f32 %v964_v39, %v942_v38 }
 0x18b   : > { %v968_v45 = vmul.f32 0.5, %v965_v43 }
 0x18d   : > { %1473 = vtanh.f32 %v968_v45 }
 0x18e   : > { %1475 = vtanh.f32 %v965_v43 }
 0x193   : > { %v1474_v50 = vpop.eup %1473 }
 0x194   : > { %v970_v52 = vadd.f32 1.0, %v1474_v50  ;;  %v1476_v58 = vpop.eup %1475 }
 0x196   : > { %v971_v53 = vmul.f32 0.5, %v970_v52  ;;  %v1020_v52 = vld [vmem:[#allocation3] sm:$0x1] }
 0x198   : > { %973 = vrot.lane.b32.xlu0 %v971_v53, %s1571_s24 }
 0x20a   : > { %v974_v59 = vpop.permute.xlu0 %973 }
 0x20b   : > { %v976_v62 = vmul.f32 %v1476_v58, %v974_v59 }
 0x20d   : > { %v981_v0 = vmul.f32 %v1471_v56, %v976_v62 }
 0x20f   : > { %v983_v1 = vsel %vm982_vm4, %v981_v0, 0.0 }
 0x210   : > { %984 = vadd.xlane.f32.xlu0 %v983_v1 }
 0x283   : > { %v985_v16 = vpop.xlane.xlu0 %984 }
 0x284   : > { %v990_v32 = vadd.f32 %v1472_v10, %v985_v16 }
 0x286   : > { %v1000_v33 = vsel %vm999_vm5, %v990_v32, -1e+30 }
 0x287   : > { %v1002_v40 = vsel %vm1001_vm6, %v1000_v33, -inf }
 0x288   : > { %v1003_v41 = vrot.slane %v1002_v40, 4 }
 0x28a   : > { %v1004_v46 = vmax.f32 %v1002_v40, %v1003_v41 }
 0x28c   : > { %v1005_v6 = vrot.slane %v1004_v46, 2 }
 0x28e   : > { %v1006_v7 = vmax.f32 %v1004_v46, %v1005_v6  ;;  %v1046_v6 = vld [vmem:[%s2036_s8] sm:$0xff] }
 0x290   : > { %v1007_v8 = vrot.slane %v1006_v7, 1 }
 0x292   : > { %v1008_v13 = vmax.f32 %v1006_v7, %v1007_v8 }
 0x294   : > { %v1010_v14 = vmax.f32 %v1009_v12, %v1008_v13 }
 0x296   : > { %v1015_v17 = vperm.slane %v1010_v14, 0  ;;  %1276 = vst.msk [vmem:[#allocation5] sm:$0x1] %vm1275_vm7, %v1010_v14  ;;  %v1011_v20 = vsub.f32 %v1009_v12, %v1010_v14 }
 0x297   : > { %1425 = dma.vmem_to_hbm [thread:$0]  (%p1983_p6), %s1306_s29, 16, %s1308_s12, [#allocation6]  }
 0x298   : > { %v1017_v18 = vsub.f32 %v1000_v33, %v1015_v17  ;;  %v1012_v22 = vmul.f32 1.442695, %v1011_v20 }
 0x29a   : > { %v1018_v19 = vmul.f32 1.442695, %v1017_v18 }
 0x29c   : > { %1477 = vpow2.f32 %v1018_v19 }
 0x29d   : > { %1479 = vpow2.f32 %v1012_v22  ;;  %v1047_v22 = vld [vmem:[%s2036_s8 + $0x8] sm:$0xff] }
 0x2a2   : > { %v1478_v21 = vpop.eup %1477 }
 0x2a3   : > { %1030 = vperm.xlu1 %1466, %v1478_v21   ;;  %v1480_v23 = vpop.eup %1479 }
 0x2a4   : > { %v1048_v25 = vperm.slane %v1480_v23, 0 }
 0x2ab   : > { %994 = vperm.xlu1 %1466, %v435_v9  }
 0x2b3   : > { %1050 = vperm.xlu1 %1466, %v1048_v25  }
 0x315   : > { %v1031_v26 = vpop.permute.xlu1 %1030 }
 0x316   : > { %v1045_v27 = vmul.f32 %v1031_v26, %v797_v48 }
 0x318   : > { %1055 = vxpose.xlu2.b32.start.end [1/1] (short) (narrow) %v1045_v27, 16 }
 0x31d   : > { %v995_v30 = vpop.permute.xlu1 %994 }
 0x31e   : > { %vm996_vm8 = vcmp.eq.s32.totalorder %v992_v29, %v995_v30 }
 0x31f   : > { %v1411_v35 = vsel %vm996_vm8, 1.0, %v1573_v31  ;;  %1412 = vmatpush.msk.msra.mxu2 %vm996_vm8, %v1574_v36  ;;  %1413 = vmatpush.msk.msra.mxu1 %vm996_vm8, %v1574_v36 }
 0x320   : > { %v1033_v42 = vmul.f32 %v1411_v35, %v1031_v26  ;;  %v1144_v44 = vsub.f32 %v1411_v35, %v1411_v35 }
 0x322   : > { %1175 = vmatpush.msra.mxu0 %v1144_v44  ;;  %v1145_v49 = vand.u32 4294901760, %v1144_v44  ;;  %v1035_v37 = vsel %vm1034_vm10, %v1033_v42, 0.0 }
 0x323   : > { %v1036_v38 = vrot.slane %v1035_v37, 4 }
 0x324   : > { %1235 = vmatpush.msrb.mxu2 %v1145_v49  ;;  %v1146_v51 = vsub.f32 %v1144_v44, %v1145_v49 }
 0x325   : > { %v1037_v39 = vadd.f32 %v1036_v38, %v1035_v37  ;;  %v1051_v40 = vpop.permute.xlu1 %1050 }
 0x326   : > { %v1147_v54 = vand.u32 4294901760, %v1146_v51  ;;  %v1053_v14 = vmul.f32 %v1051_v40, %v1046_v6  ;;  %v1054_v27 = vmul.f32 %v1051_v40, %v1047_v22 }
 0x327   : > { %v1038_v43 = vrot.slane %v1037_v39, 2 }
 0x328   : > { %1148 = vmatpush.msra.mxu3 %v1147_v54 }
 0x329   : > { %v1039_v45 = vadd.f32 %v1038_v43, %v1037_v39 }
 0x32a   : > { %1414 = vmatpush.msk.msrb.mxu3 %vm996_vm8, %v1574_v36 }
 0x32b   : > { %v1040_v50 = vrot.slane %v1039_v45, 1 }
 0x32d   : > { %v1041_v58 = vadd.f32 %v1040_v50, %v1039_v45 }
 0x37a   : > { %1467 = vset.pattern.permute.xlu2 %v1572_v5 }
 0x389   : > { %1023 = vperm.xlu2 %1467, %v1480_v23  }
 0x3b1   : > { %v1071_v47 = vpop.trf.xlu2 }
 0x3b2   : > { %v1089_v48 = vsel %vm1087_vm9, %v1071_v47, 0 }
 0x3b3   : > { %v1111_v55 = vand.u32 4294901760, %v1089_v48 }
 0x3b5   : > { %v1112_v57 = vsub.f32 %v1089_v48, %v1111_v55  ;;  %1150 = vmatmul.f32.vlgmr.msra.gmra.mxu3 %v1111_v55 }
 0x3b7   : > { %v1113_v60 = vand.u32 4294901760, %v1112_v57  ;;  %1178 = vmatmul.f32.vlgmr.msra.gmra.mxu0 %v1112_v57 }
 0x3b9   : > { %v1114_v61 = vsub.f32 %v1112_v57, %v1113_v60  ;;  %v1072_v63 = vpop.trf.xlu2  ;;  %1207 = vmatmul.f32.vlgmr.msra.gmra.mxu1 %v1113_v60 }
 0x3ba   : > { %v1092_v2 = vsel %vm1087_vm9, %v1072_v63, 0 }
 0x3bb   : > { %v1115_v3 = vand.u32 4294901760, %v1114_v61  ;;  %v1119_v4 = vand.u32 4294901760, %v1092_v2 }
 0x3bd   : > { %v1120_v11 = vsub.f32 %v1092_v2, %v1119_v4  ;;  %1116 = vmatmul.f32.vlgmr.msra.gmra.mxu2 %v1115_v3  ;;  %1154 = vmatmul.f32.gmra.mxu3 %v1119_v4 }
 0x3bf   : > { %1183 = vmatmul.f32.gmra.mxu0 %v1120_v11  ;;  %v1121_v15 = vand.u32 4294901760, %v1120_v11 }
 0x3c1   : > { %1213 = vmatmul.f32.gmra.mxu1 %v1121_v15  ;;  %v1122_v24 = vsub.f32 %v1120_v11, %v1121_v15 }
 0x3c3   : > { %v1123_v34 = vand.u32 4294901760, %v1122_v24 }
 0x3c5   : > { %1124 = vmatmul.f32.gmra.mxu2 %v1123_v34  ;;  %1263 = vmatmul.f32.vlgmr.msrb.gmra.mxu3 %v1111_v55 }
 0x3cd   : > { %1237 = vmatmul.f32.vlgmr.msrb.gmra.mxu2 %v1111_v55  ;;  %1267 = vmatmul.f32.gmra.mxu3 %v1119_v4 }
 0x3d5   : > { %1241 = vmatmul.f32.gmra.mxu2 %v1119_v4 }
 0x3e3   : > { %v1024_v53 = vpop.permute.xlu2 %1023 }
 0x3e4   : > { %v1026_v56 = vperm.slane %v1024_v53, 0 }
 0x3e6   : > { %v1027_v59 = vmul.f32 %v1026_v56, %v1020_v52 }
 0x3e8   : > { %v1042_v62 = vadd.f32 %v1041_v58, %v1027_v59 }
 0x3ea   : > { %1044 = vst.msk [vmem:[#allocation3] sm:$0x1] %vm1043_vm11, %v1042_v62 }
 0x3eb   : > { %1423 = dma.vmem_to_hbm [thread:$0]  (%p1983_p6), %s1293_s23, 16, %s1295_s15, [#allocation4]  }
 0x434   : > { %v1179_v10 = vpop.f32.mrf.mxu0 }
 0x436   : > { %v1208_v33 = vpop.f32.mrf.mxu1 }
 0x438   : > { %v1151_v0 = vpop.f32.mrf.mxu3 }
 0x43c   : > { %v1184_v13 = vpop.f32.mrf.mxu0 }
 0x43e   : > { %v1214_v20 = vpop.f32.mrf.mxu1 }
 0x440   : > { %v1117_v1 = vpop.f32.mrf.mxu2  ;;  %v1155_v5 = vpop.f32.mrf.mxu3 }
 0x441   : > { %v1152_v9 = vadd.f32 %v1151_v0, %v1117_v1 }
 0x443   : > { %v1180_v32 = vadd.f32 %v1179_v10, %v1152_v9 }
 0x445   : > { %v1209_v46 = vadd.f32 %v1208_v33, %v1180_v32 }
 0x448   : > { %v1125_v16 = vpop.f32.mrf.mxu2  ;;  %v1264_v7 = vpop.f32.mrf.mxu3 }
 0x449   : > { %v1156_v41 = vadd.f32 %v1155_v5, %v1125_v16 }
 0x44b   : > { %v1185_v17 = vadd.f32 %v1184_v13, %v1156_v41 }
 0x44d   : > { %v1215_v21 = vadd.f32 %v1214_v20, %v1185_v17 }
 0x450   : > { %v1238_v8 = vpop.f32.mrf.mxu2  ;;  %v1268_v26 = vpop.f32.mrf.mxu3 }
 0x451   : > { %v1239_v12 = vadd.f32 %v1238_v8, %v1209_v46 }
 0x453   : > { %v1265_v18 = vadd.f32 %v1264_v7, %v1239_v12 }
 0x455   : > { %v1271_v19 = vadd.f32 %v1265_v18, %v1053_v14 }
 0x457   : > { %1273 = vst.msk [vmem:[%s2036_s8] sm:$0xff] %vm1034_vm10, %v1271_v19 }
 0x458   : > { %v1242_v23 = vpop.f32.mrf.mxu2 }
 0x459   : > { %v1243_v25 = vadd.f32 %v1242_v23, %v1215_v21 }
 0x45b   : > { %v1269_v28 = vadd.f32 %v1268_v26, %v1243_v25 }
 0x45d   : > { %v1272_v29 = vadd.f32 %v1269_v28, %v1054_v27 }
 0x45f   : > { %1274 = vst.msk [vmem:[%s2036_s8 + $0x8] sm:$0xff] %vm1034_vm10, %v1272_v29 }
 0x460   : > { %1550 = dma.done.wait (%p1983_p6), [#allocation4], 16  }
 0x461   : > { %1552 = vsyncadd (%p1983_p6), [#allocation4], 4294967280 }
 0x462   : > { %1554 = dma.done.wait (%p1983_p6), [#allocation6], 16  }
 0x463   : > { %1556 = vsyncadd (%p1983_p6), [#allocation6], 4294967280 }
 0x464 PF: > { %s25_s17 = sadd.s32 1, %s1567_s17   ;;  %s2040_s15 = smov %s1563_s16 }
 0x465   : > { %p22_p7 = scmp.ge.s32.totalorder %s25_s17, 4   ;;  %s2041_s16 = smov %s2043_s18 }
 0x467   :  { %24 = sbr.rel (!%p22_p7) target bundleno = 6 (0x6), region = 108 }
 0x46c   :  { %1334 = vsyncpa [#allocation4], 1 }
 0x46d   :  { %1336 = vsyncpa [#allocation4 + $0x1], 1 }
 0x46e   :  { %1337 = vsyncpa [#allocation6], 1 }

</bundles_post_ra>
